<compile_context>
chip_gen: v7x
topology: tpu7x:2x2x1
jax: 0.10.0
libtpu: 0.0.40
codegen_flags: <defaults>
</compile_context>

<pallas_src>
import jax
import jax.numpy as jnp
from jax.experimental import pallas as pl
from jax.experimental.pallas import tpu as pltpu


def _round_up(x, m):
    return (x + m - 1) // m * m


def _padded_dims(state_dim, hidden_size, action_dim):
    """Padded sizes shared by the packer and the kernel wrapper."""
    SP = _round_up(state_dim, 8)                      # padded state feature dim
    P = max(_round_up(2 * hidden_size, 128),          # fused hidden width
            _round_up(action_dim + 1, 128))           # fused output width
    return SP, P


def make_actor_critic_kernel(SP, P, action_dim):
    W1_OFF = 0
    W2_OFF = SP
    W3_OFF = SP + P
    B_OFF = SP + 2 * P

    def kernel(x_ref, w_ref, out_ref):
        x = x_ref[...].astype(jnp.float32)

        # Static, sublane-aligned, lane-full slices of the packed weight slab.
        w1 = w_ref[W1_OFF:W1_OFF + SP, :]
        w2 = w_ref[W2_OFF:W2_OFF + P, :]
        w3 = w_ref[W3_OFF:W3_OFF + P, :]
        b1 = w_ref[B_OFF + 0:B_OFF + 1, :]
        b2 = w_ref[B_OFF + 1:B_OFF + 2, :]
        b3 = w_ref[B_OFF + 2:B_OFF + 3, :]

        # Fused actor+critic trunk: 3 matmuls total.
        h = jnp.tanh(jnp.dot(x, w1, preferred_element_type=jnp.float32) + b1)
        h = jnp.tanh(jnp.dot(h, w2, preferred_element_type=jnp.float32) + b2)
        z = jnp.dot(h, w3, preferred_element_type=jnp.float32) + b3
        # z lanes: [0, A) actor logits, [A] critic value, rest exactly 0.

        col = jax.lax.broadcasted_iota(jnp.int32, z.shape, 1)
        is_logit = col < action_dim
        is_value = col == action_dim

        # Max-stabilized softmax over the logit lanes only.
        m = jnp.max(jnp.where(is_logit, z, -jnp.inf), axis=-1, keepdims=True)
        e = jnp.where(is_logit, jnp.exp(z - m), 0.0)
        denom = jnp.sum(e, axis=-1, keepdims=True)
        inv = pl.reciprocal(denom, approx=True)       # EUP vrcp (free slot)
        inv = inv * (2.0 - denom * inv)               # 1 Newton step -> f32 exact
        probs = e * inv

        out = jnp.where(is_logit, probs, jnp.where(is_value, z, 0.0))
        out_ref[...] = out.astype(out_ref.dtype)

    return kernel


def pack_params(p, state_dim, hidden_size, action_dim):
    """Pack all weights/biases into one lane-dense (rows, P) f32 slab."""
    S, H, A = state_dim, hidden_size, action_dim
    SP, P = _padded_dims(S, H, A)
    rows = SP + 2 * P + 8
    slab = jnp.zeros((rows, P), jnp.float32)

    # Layer 1: concatenated actor/critic input projections.
    slab = slab.at[0:S, 0:H].set(p["aw1"])
    slab = slab.at[0:S, H:2 * H].set(p["cw1"])
    # Layer 2: block-diagonal.
    o = SP
    slab = slab.at[o:o + H, 0:H].set(p["aw2"])
    slab = slab.at[o + H:o + 2 * H, H:2 * H].set(p["cw2"])
    # Layer 3: actor logits in cols [0, A), critic value in col A.
    o = SP + P
    slab = slab.at[o:o + H, 0:A].set(p["aw3"])
    slab = slab.at[o + H:o + 2 * H, A:A + 1].set(p["cw3"])
    # Biases (rows B_OFF .. B_OFF+2).
    o = SP + 2 * P
    slab = slab.at[o, 0:H].set(p["ab1"][0])
    slab = slab.at[o, H:2 * H].set(p["cb1"][0])
    slab = slab.at[o + 1, 0:H].set(p["ab2"][0])
    slab = slab.at[o + 1, H:2 * H].set(p["cb2"][0])
    slab = slab.at[o + 2, 0:A].set(p["ab3"][0])
    slab = slab.at[o + 2, A].set(p["cb3"][0, 0])
    return slab


def actor_critic_forward(state, weight_slab, *, state_dim, hidden_size,
                         action_dim, bm=None):
    """Fused actor/critic forward.

    state: (B, state_dim) float32
    weight_slab: packed weights from pack_params()
    returns: (action_probs (B, action_dim), state_value (B, 1))
    """
    B, S = state.shape
    assert S == state_dim
    SP, P = _padded_dims(state_dim, hidden_size, action_dim)
    rows = SP + 2 * P + 8
    assert weight_slab.shape == (rows, P)

    if bm is None:
        # Small batches: one big tile (no grid overhead).  Large batches: cap
        # at 512 so v7x's two TensorCores each get parallel tiles and VMEM
        # stays comfortably within the 64 MiB budget.
        bm = B if B <= 512 else 512
    Bp = pl.cdiv(B, bm) * bm

    xp = state
    if (Bp, SP) != (B, S):
        xp = jnp.zeros((Bp, SP), state.dtype).at[:B, :S].set(state)

    out = pl.pallas_call(
        make_actor_critic_kernel(SP, P, action_dim),
        grid=(Bp // bm,),
        in_specs=[
            pl.BlockSpec((bm, SP), lambda i: (i, 0)),     # state tile
            pl.BlockSpec((rows, P), lambda i: (0, 0)),    # packed weight slab
        ],
        out_specs=pl.BlockSpec((bm, P), lambda i: (i, 0)),  # lane-dense output
        out_shape=jax.ShapeDtypeStruct((Bp, P), jnp.float32),
        compiler_params=pltpu.CompilerParams(
            dimension_semantics=("parallel",)),
    )(xp, weight_slab)

    probs = out[:B, :action_dim]
    value = out[:B, action_dim:action_dim + 1]
    return probs, value


def init_params(key, state_dim, hidden_size, action_dim):
    """Deterministic synthetic parameters.

    PyTorch nn.Linear stores weight as (out, in); here weights are stored
    already transposed to (in, out), biases as (1, out).
    """
    ks = jax.random.split(key, 12)

    def lin(kw, kb, fin, fout):
        bound = 1.0 / (fin ** 0.5)
        w = jax.random.uniform(kw, (fin, fout), jnp.float32, -bound, bound)
        b = jax.random.uniform(kb, (1, fout), jnp.float32, -bound, bound)
        return w, b

    aw1, ab1 = lin(ks[0], ks[1], state_dim, hidden_size)
    aw2, ab2 = lin(ks[2], ks[3], hidden_size, hidden_size)
    aw3, ab3 = lin(ks[4], ks[5], hidden_size, action_dim)
    cw1, cb1 = lin(ks[6], ks[7], state_dim, hidden_size)
    cw2, cb2 = lin(ks[8], ks[9], hidden_size, hidden_size)
    cw3, cb3 = lin(ks[10], ks[11], hidden_size, 1)
    return dict(aw1=aw1, ab1=ab1, aw2=aw2, ab2=ab2, aw3=aw3, ab3=ab3,
                cw1=cw1, cb1=cb1, cw2=cw2, cb2=cb2, cw3=cw3, cb3=cb3)


def reference_forward(state, p):
    h = jnp.tanh(state @ p["aw1"] + p["ab1"])
    h = jnp.tanh(h @ p["aw2"] + p["ab2"])
    logits = h @ p["aw3"] + p["ab3"]
    probs = jax.nn.softmax(logits, axis=-1)
    g = jnp.tanh(state @ p["cw1"] + p["cb1"])
    g = jnp.tanh(g @ p["cw2"] + p["cb2"])
    value = g @ p["cw3"] + p["cb3"]
    return probs, value


if __name__ == "__main__":
    # Small shapes: batch=16, state_dim=32, hidden_size=32, action_dim=8
    B, S, H, A = 16, 32, 32, 8
    key = jax.random.PRNGKey(0)
    k_param, k_state = jax.random.split(key)
    params = init_params(k_param, S, H, A)
    slab = pack_params(params, S, H, A)
    state = jax.random.normal(k_state, (B, S), jnp.float32)

    probs, value = actor_critic_forward(
        state, slab, state_dim=S, hidden_size=H, action_dim=A)
    jax.block_until_ready((probs, value))

    ref_probs, ref_value = reference_forward(state, params)
    assert probs.shape == (B, A) and value.shape == (B, 1)
    assert jnp.allclose(probs, ref_probs, atol=1e-5, rtol=1e-5), "actor mismatch"
    assert jnp.allclose(value, ref_value, atol=1e-5, rtol=1e-5), "critic mismatch"
    assert jnp.allclose(jnp.sum(probs, axis=-1), 1.0, atol=1e-5), "softmax not normalized"

    print("KERNEL_OK")
</pallas_src>

<mosaic_0001>
module attributes {stable_mosaic.version = 11 : i64} {
  func.func @kernel(%arg0: i32, %arg1: memref<16x32xf32, #tpu.memory_space<vmem>>, %arg2: memref<296x128xf32, #tpu.memory_space<vmem>>, %arg3: memref<16x128xf32, #tpu.memory_space<vmem>>) attributes {dimension_semantics = [#tpu.dimension_semantics<parallel>], iteration_bounds = array<i64: 1>, scalar_prefetch = 0 : i64, scratch_operands = 0 : i64, tpu.core_type = #tpu.core_type<tc>, window_params = [{transform_indices = @transform_0, window_bounds = array<i64: 16, 32>}, {pipeline_mode = #tpu.pipeline_mode<synchronous>, transform_indices = @transform_1, window_bounds = array<i64: 296, 128>}, {transform_indices = @transform_2, window_bounds = array<i64: 16, 128>}]} {
    %c0 = arith.constant 0 : index
    %c0_0 = arith.constant 0 : index
    %0 = vector.load %arg1[%c0, %c0_0] : memref<16x32xf32, #tpu.memory_space<vmem>>, vector<16x32xf32>
    %c0_1 = arith.constant 0 : index
    %c0_2 = arith.constant 0 : index
    %1 = vector.load %arg2[%c0_1, %c0_2] : memref<296x128xf32, #tpu.memory_space<vmem>>, vector<32x128xf32>
    %c32 = arith.constant 32 : index
    %c0_3 = arith.constant 0 : index
    %2 = vector.load %arg2[%c32, %c0_3] : memref<296x128xf32, #tpu.memory_space<vmem>>, vector<128x128xf32>
    %c160 = arith.constant 160 : index
    %c0_4 = arith.constant 0 : index
    %3 = vector.load %arg2[%c160, %c0_4] : memref<296x128xf32, #tpu.memory_space<vmem>>, vector<128x128xf32>
    %c288 = arith.constant 288 : index
    %c0_5 = arith.constant 0 : index
    %4 = vector.load %arg2[%c288, %c0_5] : memref<296x128xf32, #tpu.memory_space<vmem>>, vector<1x128xf32>
    %c289 = arith.constant 289 : index
    %c0_6 = arith.constant 0 : index
    %5 = vector.load %arg2[%c289, %c0_6] : memref<296x128xf32, #tpu.memory_space<vmem>>, vector<1x128xf32>
    %c290 = arith.constant 290 : index
    %c0_7 = arith.constant 0 : index
    %6 = vector.load %arg2[%c290, %c0_7] : memref<296x128xf32, #tpu.memory_space<vmem>>, vector<1x128xf32>
    %cst = arith.constant dense<0.000000e+00> : vector<16x128xf32>
    %7 = tpu.matmul %0, %1, %cst {dimension_numbers = #tpu.dot_dimension_numbers<[1], [0], [0], [1], [0, 0, 1, 1], [], []>} : vector<16x32xf32>, vector<32x128xf32>, vector<16x128xf32> -> vector<16x128xf32>
    %8 = vector.broadcast %4 : vector<1x128xf32> to vector<16x128xf32>
    %9 = arith.addf %7, %8 : vector<16x128xf32>
    %10 = math.tanh %9 : vector<16x128xf32>
    %cst_8 = arith.constant dense<0.000000e+00> : vector<16x128xf32>
    %11 = tpu.matmul %10, %2, %cst_8 {dimension_numbers = #tpu.dot_dimension_numbers<[1], [0], [0], [1], [0, 0, 1, 1], [], []>} : vector<16x128xf32>, vector<128x128xf32>, vector<16x128xf32> -> vector<16x128xf32>
    %12 = vector.broadcast %5 : vector<1x128xf32> to vector<16x128xf32>
    %13 = arith.addf %11, %12 : vector<16x128xf32>
    %14 = math.tanh %13 : vector<16x128xf32>
    %cst_9 = arith.constant dense<0.000000e+00> : vector<16x128xf32>
    %15 = tpu.matmul %14, %3, %cst_9 {dimension_numbers = #tpu.dot_dimension_numbers<[1], [0], [0], [1], [0, 0, 1, 1], [], []>} : vector<16x128xf32>, vector<128x128xf32>, vector<16x128xf32> -> vector<16x128xf32>
    %16 = vector.broadcast %6 : vector<1x128xf32> to vector<16x128xf32>
    %17 = arith.addf %15, %16 : vector<16x128xf32>
    %18 = tpu.iota {dimensions = array<i32: 1>} : vector<16x128xi32>
    %c8_i32 = arith.constant 8 : i32
    %19 = vector.broadcast %c8_i32 : i32 to vector<16x128xi32>
    %20 = arith.cmpi slt, %18, %19 : vector<16x128xi32>
    %c8_i32_10 = arith.constant 8 : i32
    %21 = vector.broadcast %c8_i32_10 : i32 to vector<16x128xi32>
    %22 = arith.cmpi eq, %18, %21 : vector<16x128xi32>
    %cst_11 = arith.constant 0xFF800000 : f32
    %23 = vector.broadcast %cst_11 : f32 to vector<16x128xf32>
    %24 = arith.select %20, %17, %23 : vector<16x128xi1>, vector<16x128xf32>
    %cst_12 = arith.constant dense<0xFF800000> : vector<16xf32>
    %25 = vector.multi_reduction <maximumf>, %24, %cst_12 [1] : vector<16x128xf32> to vector<16xf32>
    %26 = vector.shape_cast %25 : vector<16xf32> to vector<16x1xf32>
    %27 = vector.broadcast %26 : vector<16x1xf32> to vector<16x128xf32>
    %28 = arith.subf %17, %27 : vector<16x128xf32>
    %29 = math.exp %28 : vector<16x128xf32>
    %cst_13 = arith.constant 0.000000e+00 : f32
    %30 = vector.broadcast %cst_13 : f32 to vector<16x128xf32>
    %31 = arith.select %20, %29, %30 : vector<16x128xi1>, vector<16x128xf32>
    %cst_14 = arith.constant dense<0.000000e+00> : vector<16xf32>
    %32 = vector.multi_reduction <add>, %31, %cst_14 [1] : vector<16x128xf32> to vector<16xf32>
    %33 = vector.shape_cast %32 : vector<16xf32> to vector<16x1xf32>
    %34 = tpu.reciprocal %33 {approx = true} : vector<16x1xf32> -> vector<16x1xf32>
    %35 = arith.mulf %33, %34 : vector<16x1xf32>
    %cst_15 = arith.constant 2.000000e+00 : f32
    %36 = vector.broadcast %cst_15 : f32 to vector<16x1xf32>
    %37 = arith.subf %36, %35 : vector<16x1xf32>
    %38 = arith.mulf %34, %37 : vector<16x1xf32>
    %39 = vector.broadcast %38 : vector<16x1xf32> to vector<16x128xf32>
    %40 = arith.mulf %31, %39 : vector<16x128xf32>
    %cst_16 = arith.constant 0.000000e+00 : f32
    %41 = vector.broadcast %cst_16 : f32 to vector<16x128xf32>
    %42 = arith.select %22, %17, %41 : vector<16x128xi1>, vector<16x128xf32>
    %43 = arith.select %20, %40, %42 : vector<16x128xi1>, vector<16x128xf32>
    %c0_17 = arith.constant 0 : index
    %c0_18 = arith.constant 0 : index
    %44 = vector.load %arg3[%c0_17, %c0_18] : memref<16x128xf32, #tpu.memory_space<vmem>>, vector<16x128xf32>
    tpu.vector_store %arg3[%c0_17, %c0_18], %43 {strides = array<i32>} : memref<16x128xf32, #tpu.memory_space<vmem>>, vector<16x128xf32>,
    return
  }
  func.func @transform_0(%arg0: i32) -> (i32, i32) {
    %c0_i32 = arith.constant 0 : i32
    %c0_i32_0 = arith.constant 0 : i32
    return %arg0, %c0_i32 : i32, i32
  }
  func.func @transform_1(%arg0: i32) -> (i32, i32) {
    %c0_i32 = arith.constant 0 : i32
    %c0_i32_0 = arith.constant 0 : i32
    %c0_i32_1 = arith.constant 0 : i32
    return %c0_i32, %c0_i32_0 : i32, i32
  }
  func.func @transform_2(%arg0: i32) -> (i32, i32) {
    %c0_i32 = arith.constant 0 : i32
    %c0_i32_0 = arith.constant 0 : i32
    return %arg0, %c0_i32 : i32, i32
  }
}

</mosaic_0001>

<bundles_post_ra>
// kernel: tpu_custom_call.1
= control target key start
LH: loop header
LB: loop body
LE: loop exit
PB: predicated region body
PF: predicated region fallthrough
CT: control target
= control target key end

     0   :  { %7 = vsyncpa [#allocation3], 0  ;;  %s751_s0 = inlined_call_operand.hbm [shape: f32[16,32], index: 0, kind: input, shape index: {}]   ;;  %s752_s1 = inlined_call_operand.hbm [shape: f32[296,128], index: 1, kind: input, shape index: {}]   ;;  %s753_s2 = inlined_call_operand.hbm [shape: f32[16,128], index: 2, kind: output, shape index: {}]  }
   0x1   :  { %8 = vsyncpa [#allocation6], 0 }
   0x2   :  { %9 = vsyncpa [#allocation4], 0  ;;  %s678_s9 = smov [#allocation2]   ;;  %s606_s13 = scalar_lea.hbm %s751_s0, 256 }
   0x3   :  { %s15_s10 = sshll.u32 %s678_s9, 4  ;;  %p607_p0 = scmp.ne.s32.totalorder %s751_s0, %s606_s13  ;;  %s16_s10 = int_to_ptr.vmem [resolvable:$true] %s15_s10 }
   0x4   :  { %p610_p1 = scmp.lt.u32.totalorder %s606_s13, %s751_s0 }
   0x6   :  { %p612_p2 = pnand %p610_p1, %p607_p0 }
   0x8   :  { %615 = shalt.err (!%p612_p2)
}
   0x9   :  { %s616_s18 = scalar_lea.vmem %s16_s10, 256  ;;  %p621_p4 = scmp.lt.s32.totalorder %s16_s10, %s16_s10 }
   0xa   :  { %p617_p3 = scmp.ne.s32.totalorder %s16_s10, %s616_s18  ;;  %p622_p5 = scmp.lt.s32.totalorder %s616_s18, %s616_s18 }
   0xc   :  { %p623_p6 = por %p622_p5, %p621_p4 }
   0xe   :  { %p624_p7 = pnand %p623_p6, %p617_p3 }
  0x10   :  { %627 = shalt.err (!%p624_p7)
}
  0x11   :  { %s679_s19 = smov 128   ;;  %s680_s20 = smov 8  }
  0x12   :  { %21 = dma.hbm_to_vmem [thread:$0]  %s751_s0, 256, %s16_s10, [#allocation3], %s679_s19, %s679_s19, %s680_s20  }
  0x13   :  { %s681_s23 = smov [#allocation5]   ;;  %s628_s27 = scalar_lea.hbm %s752_s1, 4736 }
  0x14   :  { %s27_s24 = sshll.u32 %s681_s23, 4  ;;  %p629_p8 = scmp.ne.s32.totalorder %s752_s1, %s628_s27  ;;  %s28_s24 = int_to_ptr.vmem [resolvable:$true] %s27_s24 }
  0x15   :  { %p632_p9 = scmp.lt.u32.totalorder %s628_s27, %s752_s1 }
  0x17   :  { %p634_p10 = pnand %p632_p9, %p629_p8 }
  0x19   :  { %637 = shalt.err (!%p634_p10)
}
  0x1a   :  { %s638_s4 = scalar_lea.vmem %s28_s24, 4736  ;;  %p643_p12 = scmp.lt.s32.totalorder %s28_s24, %s28_s24 }
  0x1b   :  { %p639_p11 = scmp.ne.s32.totalorder %s28_s24, %s638_s4  ;;  %p644_p13 = scmp.lt.s32.totalorder %s638_s4, %s638_s4 }
  0x1d   :  { %p645_p0 = por %p644_p13, %p643_p12 }
  0x1f   :  { %p646_p1 = pnand %p645_p0, %p639_p11 }
  0x21   :  { %649 = shalt.err (!%p646_p1)
}
  0x22   :  { %33 = dma.hbm_to_vmem [thread:$0]  %s752_s1, 4736, %s28_s24, [#allocation6], %s679_s19, %s679_s19, %s680_s20  }
  0x23   :  { %672 = dma.done.wait [#allocation3], 256  }
  0x24   :  { %673 = vsyncadd [#allocation3], 4294967040 }
  0x25   :  { %674 = dma.done.wait [#allocation6], 4736  }
  0x26   :  { %675 = vsyncadd [#allocation6], 4294962560  ;;  %vm85_vm0 = vcmask 261120   ;;  %v42_v0 = vld [vmem:[#allocation5] sm:$0xff]  ;;  %v43_v1 = vld [vmem:[#allocation5 + $0x8] sm:$0xff]  ;;  %s682_s1 = smov [#allocation7]  }
  0x27   :  { %v44_v2 = vld [vmem:[#allocation5 + $0x10] sm:$0xff]  ;;  %v513_v3 = vpack.c.bf16 %v43_v1, %v42_v0  ;;  %v45_v4 = vld [vmem:[#allocation5 + $0x18] sm:$0xff]  ;;  %v46_v7 = vld [vmem:[#allocation5 + $0x20] sm:$0xff]  ;;  %s372_s6 = sshll.u32 %s682_s1, 4  ;;  %s373_s6 = int_to_ptr.vmem [resolvable:$true] %s372_s6 }
  0x28   :  { %v40_v5 = vld [vmem:[#allocation2] sm:$0xff]  ;;  %v517_v6 = vpack.c.bf16 %v45_v4, %v44_v2  ;;  %v47_v8 = vld [vmem:[#allocation5 + $0x28] sm:$0xff]  ;;  %v49_v11 = vld [vmem:[#allocation5 + $0x38] sm:$0xff]  ;;  %s650_s7 = scalar_lea.vmem %s373_s6, 256  ;;  %p655_p3 = scmp.lt.s32.totalorder %s373_s6, %s373_s6 }
  0x29   :  { %440 = vmatprep.mubr.msk.f32.mxu0 %vm85_vm0, %v40_v5  ;;  %v48_v9 = vld [vmem:[#allocation5 + $0x30] sm:$0xff]  ;;  %514 = vmatprep.subr.bf16.mxu0 %v513_v3  ;;  %v521_v10 = vpack.c.bf16 %v47_v8, %v46_v7  ;;  %v50_v13 = vld [vmem:[#allocation5 + $0x40] sm:$0xff]  ;;  %v51_v14 = vld [vmem:[#allocation5 + $0x48] sm:$0xff]  ;;  %p651_p2 = scmp.ne.s32.totalorder %s373_s6, %s650_s7  ;;  %p656_p4 = scmp.lt.s32.totalorder %s650_s7, %s650_s7 }
  0x2a   :  { %516 = vmatpush3.bf16.msra.mxu0 %v513_v3  ;;  %v525_v12 = vpack.c.bf16 %v49_v11, %v48_v9  ;;  %v529_v15 = vpack.c.bf16 %v51_v14, %v50_v13  ;;  %v41_v16 = vld [vmem:[#allocation2 + $0x8] sm:$0xff]  ;;  %v52_v17 = vld [vmem:[#allocation5 + $0x50] sm:$0xff]  ;;  %v54_v20 = vld [vmem:[#allocation5 + $0x60] sm:$0xff] }
  0x2b   :  { %518 = vmatprep.subr.bf16.mxu0 %v517_v6  ;;  %522 = vmatprep.subr.bf16.mxu1 %v521_v10  ;;  %v53_v18 = vld [vmem:[#allocation5 + $0x58] sm:$0xff]  ;;  %v55_v21 = vld [vmem:[#allocation5 + $0x68] sm:$0xff]  ;;  %v56_v23 = vld [vmem:[#allocation5 + $0x70] sm:$0xff]  ;;  %p657_p5 = por %p656_p4, %p655_p3 }
  0x2c   :  { %524 = vmatpush3.bf16.msra.mxu1 %v521_v10  ;;  %v533_v19 = vpack.c.bf16 %v53_v18, %v52_v17  ;;  %v537_v22 = vpack.c.bf16 %v55_v21, %v54_v20  ;;  %v57_v24 = vld [vmem:[#allocation5 + $0x78] sm:$0xff]  ;;  %v58_v26 = vld [vmem:[#allocation5 + $0x80] sm:$0xff]  ;;  %v59_v27 = vld [vmem:[#allocation5 + $0x88] sm:$0xff] }
  0x2d   :  { %526 = vmatprep.subr.bf16.mxu1 %v525_v12  ;;  %v541_v25 = vpack.c.bf16 %v57_v24, %v56_v23  ;;  %v60_v28 = vld [vmem:[#allocation5 + $0x90] sm:$0xff]  ;;  %v545_v29 = vpack.c.bf16 %v59_v27, %v58_v26  ;;  %v61_v30 = vld [vmem:[#allocation5 + $0x98] sm:$0xff]  ;;  %v62_v32 = vld [vmem:[#allocation5 + $0xa0] sm:$0xff]  ;;  %p658_p6 = pnand %p657_p5, %p651_p2 }
  0x2e   :  { %520 = vmatpush3.bf16.msra.mxu0 %v517_v6  ;;  %v549_v31 = vpack.c.bf16 %v61_v30, %v60_v28  ;;  %v63_v33 = vld [vmem:[#allocation5 + $0xa8] sm:$0xff]  ;;  %v64_v34 = vld [vmem:[#allocation5 + $0xb0] sm:$0xff]  ;;  %v65_v36 = vld [vmem:[#allocation5 + $0xb8] sm:$0xff]  ;;  %v329_v6 = vlaneseq }
  0x2f   :  { %v553_v35 = vpack.c.bf16 %v63_v33, %v62_v32  ;;  %v557_v37 = vpack.c.bf16 %v65_v36, %v64_v34  ;;  %v66_v38 = vld [vmem:[#allocation5 + $0xc0] sm:$0xff]  ;;  %v67_v39 = vld [vmem:[#allocation5 + $0xc8] sm:$0xff]  ;;  %v68_v41 = vld [vmem:[#allocation5 + $0xd0] sm:$0xff] }
  0x30   :  { %528 = vmatpush3.bf16.msra.mxu1 %v525_v12  ;;  %v561_v40 = vpack.c.bf16 %v67_v39, %v66_v38  ;;  %v69_v42 = vld [vmem:[#allocation5 + $0xd8] sm:$0xff]  ;;  %v385_v44 = vld [vmem:[#allocation5 + $0x120] ss:$0 sm:$0xff]  ;;  %v71_v52 = vld [vmem:[#allocation5 + $0xe8] sm:$0xff]  ;;  %v330_v7 = vand.u32 127, %v329_v6 }
  0x31   :  { %441 = vmatmul.mubr.msk.f32.vlgmr.msra.gmra.mrb[0].mxu0 %vm85_vm0, %v41_v16  ;;  %530 = vmatprep.subr.bf16.mxu1 %v529_v15  ;;  %v565_v43 = vpack.c.bf16 %v69_v42, %v68_v41  ;;  %v70_v51 = vld [vmem:[#allocation5 + $0xe0] sm:$0xff]  ;;  %v72_v54 = vld [vmem:[#allocation5 + $0xf0] sm:$0xff]  ;;  %v73_v55 = vld [vmem:[#allocation5 + $0xf8] sm:$0xff] }
  0x32   :  { %554 = vmatprep.subr.bf16.mxu0 %v553_v35  ;;  %v569_v53 = vpack.c.bf16 %v71_v52, %v70_v51  ;;  %v573_v56 = vpack.c.bf16 %v73_v55, %v72_v54  ;;  %v74_v57 = vld [vmem:[#allocation5 + $0x100] sm:$0xff]  ;;  %v75_v58 = vld [vmem:[#allocation5 + $0x108] sm:$0xff]  ;;  %v76_v59 = vld [vmem:[#allocation5 + $0x110] sm:$0xff]  ;;  %vm331_vm1 = vcmp.lt.s32.totalorder %v330_v7, 8  ;;  %vm332_vm2 = vcmp.eq.s32.totalorder %v330_v7, 8 }
  0x33   :  { %556 = vmatpush3.bf16.msra.mxu0 %v553_v35  ;;  %v577_v60 = vpack.c.bf16 %v75_v58, %v74_v57  ;;  %v77_v61 = vld [vmem:[#allocation5 + $0x118] sm:$0xff]  ;;  %v388_v63 = vld [vmem:[#allocation5 + $0x121] ss:$0 sm:$0xff]  ;;  %v389_v8 = vld [vmem:[#allocation5 + $0x122] ss:$0 sm:$0xff] }
  0x34   :  { %532 = vmatpush3.bf16.msra.mxu1 %v529_v15  ;;  %558 = vmatprep.subr.bf16.mxu0 %v557_v37  ;;  %v581_v62 = vpack.c.bf16 %v77_v61, %v76_v59 }
  0x35   :  { %534 = vmatprep.subr.bf16.mxu1 %v533_v19 }
  0x37   :  { %560 = vmatpush3.bf16.msra.mxu0 %v557_v37 }
  0x38   :  { %536 = vmatpush3.bf16.msra.mxu1 %v533_v19  ;;  %562 = vmatprep.subr.bf16.mxu0 %v561_v40 }
  0x39   :  { %538 = vmatprep.subr.bf16.mxu1 %v537_v22 }
  0x3b   :  { %564 = vmatpush3.bf16.msra.mxu0 %v561_v40 }
  0x3c   :  { %540 = vmatpush3.bf16.msra.mxu1 %v537_v22  ;;  %566 = vmatprep.subr.bf16.mxu0 %v565_v43 }
  0x3d   :  { %542 = vmatprep.subr.bf16.mxu1 %v541_v25 }
  0x3f   :  { %568 = vmatpush3.bf16.msra.mxu0 %v565_v43 }
  0x40   :  { %544 = vmatpush3.bf16.msra.mxu1 %v541_v25  ;;  %570 = vmatprep.subr.bf16.mxu0 %v569_v53 }
  0x41   :  { %546 = vmatprep.subr.bf16.mxu1 %v545_v29 }
  0x43   :  { %572 = vmatpush3.bf16.msra.mxu0 %v569_v53 }
  0x44   :  { %548 = vmatpush3.bf16.msra.mxu1 %v545_v29  ;;  %574 = vmatprep.subr.bf16.mxu0 %v573_v56 }
  0x45   :  { %550 = vmatprep.subr.bf16.mxu1 %v549_v31 }
  0x47   :  { %576 = vmatpush3.bf16.msra.mxu0 %v573_v56 }
  0x48   :  { %552 = vmatpush3.bf16.msra.mxu1 %v549_v31  ;;  %578 = vmatprep.subr.bf16.mxu0 %v577_v60 }
  0x4b   :  { %580 = vmatpush3.bf16.msra.mxu0 %v577_v60 }
  0x4c   :  { %582 = vmatprep.subr.bf16.mxu0 %v581_v62 }
  0x4f   :  { %584 = vmatpush3.bf16.msra.mxu0 %v581_v62 }
 0x104   :  { %v442_v45 = vpop.f32.mrb[0].mxu0 }
 0x105   :  { %v164_v46 = vadd.f32 %v442_v45, %v385_v44  ;;  %v158_v47 = vpop.f32.mrb[1].mxu0 }
 0x106   :  { %v159_v48 = vadd.f32 %v385_v44, %v158_v47 }
 0x108   :  { %590 = vtanh.f32 %v159_v48 }
 0x109   :  { %592 = vtanh.f32 %v164_v46 }
 0x112   :  { %v591_v49 = vpop.eup %590 }
 0x113   :  { %v593_v50 = vpop.eup %592  ;;  %475 = vmatprep.mubr.f32.mxu1 %v591_v49 }
 0x114   :  { %476 = vmatmul.mubr.f32.vlgmr.msra.gmra.mrb[0].mxu1 %v593_v50 }
 0x1e7   :  { %v477_v0 = vpop.f32.mrb[0].mxu1 }
 0x1e8   :  { %v245_v1 = vadd.f32 %v477_v0, %v388_v63  ;;  %v239_v2 = vpop.f32.mrb[1].mxu1 }
 0x1e9   :  { %v240_v3 = vadd.f32 %v388_v63, %v239_v2 }
 0x1eb   :  { %594 = vtanh.f32 %v240_v3 }
 0x1ec   :  { %596 = vtanh.f32 %v245_v1 }
 0x1f5   :  { %v595_v4 = vpop.eup %594 }
 0x1f6   :  { %v597_v5 = vpop.eup %596  ;;  %510 = vmatprep.mubr.f32.mxu0 %v595_v4 }
 0x1f7   :  { %511 = vmatmul.mubr.f32.vlgmr.msra.gmra.mrb[2].mxu0 %v597_v5 }
 0x2ca   :  { %v512_v9 = vpop.f32.mrb[2].mxu0 }
 0x2cb   :  { %v320_v10 = vpop.f32.mrb[3].mxu0  ;;  %v326_v12 = vadd.f32 %v512_v9, %v389_v8 }
 0x2cc   :  { %v321_v11 = vadd.f32 %v389_v8, %v320_v10 }
 0x2cd   :  { %v334_v14 = vsel %vm331_vm1, %v326_v12, -inf  ;;  %v362_v39 = vsel %vm332_vm2, %v326_v12, 0.0 }
 0x2ce   :  { %v333_v13 = vsel %vm331_vm1, %v321_v11, -inf  ;;  %v361_v35 = vsel %vm332_vm2, %v321_v11, 0.0 }
 0x2cf   :  { %335 = vmax.xlane.f32.xlu0 %v333_v13 }
 0x2d3   :  { %337 = vmax.xlane.f32.xlu0 %v334_v14 }
 0x35c   :  { %v336_v15 = vpop.xlane.xlu0 %335 }
 0x35d   :  { %v339_v16 = vsub.f32 %v321_v11, %v336_v15 }
 0x35f   :  { %v341_v17 = vmul.f32 1.442695, %v339_v16 }
 0x360   :  { %v338_v18 = vpop.xlane.xlu0 %337 }
 0x361   :  { %598 = vpow2.f32 %v341_v17  ;;  %v340_v19 = vsub.f32 %v326_v12, %v338_v18 }
 0x363   :  { %v343_v20 = vmul.f32 1.442695, %v340_v19 }
 0x365   :  { %600 = vpow2.f32 %v343_v20 }
 0x36b   :  { %v599_v21 = vpop.eup %598 }
 0x36c   :  { %v345_v22 = vsel %vm331_vm1, %v599_v21, 0.0 }
 0x36d   :  { %347 = vadd.xlane.f32.xlu1 %v345_v22 }
 0x36f   :  { %v601_v23 = vpop.eup %600 }
 0x370   :  { %v346_v24 = vsel %vm331_vm1, %v601_v23, 0.0 }
 0x371   :  { %349 = vadd.xlane.f32.xlu1 %v346_v24 }
 0x3fa   :  { %v348_v25 = vpop.xlane.xlu1 %347 }
 0x3fb   :  { %602 = vrcp.f32 %v348_v25 }
 0x3fe   :  { %v350_v26 = vpop.xlane.xlu1 %349 }
 0x3ff   :  { %604 = vrcp.f32 %v350_v26 }
 0x405   :  { %v603_v27 = vpop.eup %602 }
 0x406   :  { %v353_v28 = vmul.f32 %v603_v27, %v348_v25 }
 0x408   :  { %v355_v29 = vsub.f32 2.0, %v353_v28 }
 0x409   :  { %v605_v30 = vpop.eup %604 }
 0x40a   :  { %v357_v31 = vmul.f32 %v603_v27, %v355_v29  ;;  %v354_v32 = vmul.f32 %v605_v30, %v350_v26 }
 0x40c   :  { %v359_v33 = vmul.f32 %v357_v31, %v345_v22  ;;  %v356_v34 = vsub.f32 2.0, %v354_v32 }
 0x40e   :  { %v358_v36 = vmul.f32 %v605_v30, %v356_v34  ;;  %v363_v37 = vsel %vm331_vm1, %v359_v33, %v361_v35 }
 0x40f   :  { %365 = vst [vmem:[#allocation7] sm:$0xff] %v363_v37 }
 0x410   :  { %v360_v38 = vmul.f32 %v358_v36, %v346_v24 }
 0x412   :  { %v364_v40 = vsel %vm331_vm1, %v360_v38, %v362_v39 }
 0x413   :  { %366 = vst [vmem:[#allocation7 + $0x8] sm:$0xff] %v364_v40 }
 0x414   :  { %661 = shalt.err (!%p658_p6)
}
 0x415   :  { %s662_s10 = scalar_lea.hbm %s753_s2, 256 }
 0x416   :  { %p663_p7 = scmp.ne.s32.totalorder %s753_s2, %s662_s10  ;;  %p666_p8 = scmp.lt.u32.totalorder %s662_s10, %s753_s2 }
 0x418   :  { %p668_p9 = pnand %p666_p8, %p663_p7 }
 0x41a   :  { %671 = shalt.err (!%p668_p9)
}
 0x41b   :  { %378 = dma.vmem_to_hbm [thread:$0]  %s373_s6, 256, %s753_s2, [#allocation4], %s679_s19, %s679_s19, %s680_s20  }
 0x41c   :  { %676 = dma.done.wait [#allocation4], 256  }
 0x41d   :  { %677 = vsyncadd [#allocation4], 4294967040 }
 0x41e   :  { %382 = vsyncpa [#allocation3], 1 }
 0x41f   :  { %383 = vsyncpa [#allocation6], 1 }
 0x420   :  { %384 = vsyncpa [#allocation4], 1 }

</bundles_post_ra>
